<compile_context>
chip_gen: v7x
topology: tpu7x:2x2x1
jax: 0.10.0
libtpu: 0.0.40
codegen_flags: <defaults>
</compile_context>

<pallas_src>
import functools

import jax
import jax.numpy as jnp
from jax.experimental import pallas as pl
from jax.experimental.pallas import tpu as pltpu

# Deterministic "module parameters" (FocalLoss.__init__ args).
ALPHA = 0.25
GAMMA = 2.0
SIZE_AVERAGE = True


def _round_up(x, m):
    return ((x + m - 1) // m) * m


def _focal_pow(u, gamma):
    """(1 - pt) ** gamma.  Integer gamma -> VPU multiply chain (no EUP pow)."""
    g = float(gamma)
    if g == 0.0:
        return jnp.ones_like(u)
    if g.is_integer() and 1.0 <= g <= 8.0:
        r = u
        for _ in range(int(g) - 1):
            r = r * u
        return r
    # Non-integer gamma: fall back to pow (exp/log on the EUP).
    return u ** jnp.asarray(g, dtype=u.dtype)


def _focal_loss_kernel(x_ref, t_ref, out_ref, *, alpha, gamma, tile_n,
                       n_total):
    pid = pl.program_id(0)

    x = x_ref[...].astype(jnp.float32)   # (TILE_N, C); bf16 ingress OK
    t = t_ref[...]                       # (TILE_N, 1) int32 targets
    tn, c = x.shape

    # Mask rows that are out of bounds for the last (partial) block.
    row = pid * tile_n + jax.lax.broadcasted_iota(jnp.int32, (tn, 1), 0)
    valid = row < n_total

    # Numerically stable log-softmax pieces; full (N, C) logp never built.
    m = jnp.max(x, axis=-1, keepdims=True)
    z = x - m
    lse = jnp.log(jnp.sum(jnp.exp(z), axis=-1, keepdims=True))     # (TILE_N,1)

    # Gather z[i, target[i]]  (== log_softmax(x).index_select(-1, t).diag()).
    col = jax.lax.broadcasted_iota(jnp.int32, (tn, c), 1)
    zt = jnp.sum(jnp.where(col == t, z, 0.0), axis=-1, keepdims=True)
    logpt = zt - lse                                               # (TILE_N,1)

    pt = jnp.exp(logpt)                  # pt taken BEFORE alpha weighting
    w = jnp.where(t > 0, jnp.float32(alpha), jnp.float32(1.0 - alpha))
    loss = -_focal_pow(1.0 - pt, gamma) * (logpt * w)              # (TILE_N,1)
    # Select (NOT multiply) so garbage/NaN in OOB rows cannot propagate.
    loss = jnp.where(valid, loss, 0.0)

    partial = jnp.sum(loss)

    # Lane-dense (8, 128) output block: partial at [0, 0], zeros elsewhere.
    r8 = jax.lax.broadcasted_iota(jnp.int32, (8, 128), 0)
    c8 = jax.lax.broadcasted_iota(jnp.int32, (8, 128), 1)
    out_ref[...] = jnp.where((r8 == 0) & (c8 == 0), partial, jnp.float32(0.0))


def _vmem_budget():
    """(tile budget bytes, vmem_limit_bytes) — conservative v7x default."""
    budget, limit = 24 * 1024 * 1024, 32 * 1024 * 1024
    try:
        info = pltpu.get_tpu_info()
        vmem = getattr(info, "vmem_capacity_bytes", None)
        if vmem is not None and vmem >= 96 * 1024 * 1024:   # v5e / v6e
            budget, limit = 56 * 1024 * 1024, 64 * 1024 * 1024
    except Exception:
        pass
    return budget, limit


def _pick_tile_n(n, c, itemsize, budget_bytes):
    c_pad = _round_up(max(c, 1), 128)
    # ~8 full-tile f32 intermediates (x cast, z, exp(z), iota, selects, ...)
    # + 2x double-buffered input DMA blocks at the real ingress itemsize
    # + a little per-row slack.
    per_row = 8 * c_pad * 4 + 2 * c_pad * itemsize + 64
    rows = budget_bytes // per_row
    rows = max(8, (rows // 8) * 8)
    rows = min(rows, 32768)
    return min(rows, _round_up(max(n, 1), 8))


def focal_loss(logits, target, *, alpha=ALPHA, gamma=GAMMA,
               size_average=SIZE_AVERAGE, block_rows=None):
    """Pallas focal loss. logits: (N, C) f32/bf16; target: (N,) int. -> scalar f32."""
    n, c = logits.shape
    budget, vmem_limit = _vmem_budget()
    if block_rows is not None:
        tile_n = max(8, _round_up(int(block_rows), 8))
        tile_n = min(tile_n, _round_up(n, 8))
    else:
        tile_n = _pick_tile_n(n, c, logits.dtype.itemsize, budget)
    grid = (pl.cdiv(n, tile_n),)
    num_blocks = grid[0]

    target2d = target.reshape(n, 1).astype(jnp.int32)

    kernel = functools.partial(
        _focal_loss_kernel, alpha=float(alpha), gamma=float(gamma),
        tile_n=tile_n, n_total=n)

    cost = pl.CostEstimate(
        flops=8 * n * c,
        transcendentals=n * c + 3 * n,
        bytes_accessed=n * c * logits.dtype.itemsize + n * 4
        + num_blocks * 8 * 128 * 4)

    partials = pl.pallas_call(
        kernel,
        out_shape=jax.ShapeDtypeStruct((num_blocks * 8, 128), jnp.float32),
        grid=grid,
        in_specs=[
            pl.BlockSpec((tile_n, c), lambda i: (i, 0)),   # logits tile
            pl.BlockSpec((tile_n, 1), lambda i: (i, 0)),   # target tile
        ],
        out_specs=pl.BlockSpec((8, 128), lambda i: (i, 0)),
        compiler_params=pltpu.CompilerParams(
            # Independent per-tile partial sums -> "parallel" (2 TCs on v7x).
            dimension_semantics=("parallel",),
            vmem_limit_bytes=vmem_limit),
        cost_estimate=cost,
    )(logits, target2d)

    total = jnp.sum(partials)            # only [0,0] of each block is nonzero
    if size_average:
        total = total / jnp.float32(n)   # global N (mean), not block size
    return total


def _focal_loss_ref(logits, target, alpha=ALPHA, gamma=GAMMA,
                    size_average=SIZE_AVERAGE):
    logp = jax.nn.log_softmax(logits.astype(jnp.float32), axis=-1)
    logpt = jnp.take_along_axis(logp, target[:, None].astype(jnp.int32),
                                axis=-1)[:, 0]
    pt = jnp.exp(logpt)
    pos = (target > 0).astype(jnp.float32)
    logpt_w = logpt * alpha * pos + logpt * (1.0 - alpha) * (1.0 - pos)
    loss = -1.0 * (1.0 - pt) ** gamma * logpt_w
    return loss.mean() if size_average else loss.sum()


def focal_loss_auto(logits, target, **kw):
    """Dispatch: tiny problems are latency-bound -> plain XLA; else Pallas."""
    n, c = logits.shape
    if n * c < 64 * 1024:
        return _focal_loss_ref(logits, target,
                               alpha=kw.get("alpha", ALPHA),
                               gamma=kw.get("gamma", GAMMA),
                               size_average=kw.get("size_average",
                                                   SIZE_AVERAGE))
    return focal_loss(logits, target, **kw)


if __name__ == "__main__":
    key = jax.random.PRNGKey(0)
    k1, k2, k3, k4 = jax.random.split(key, 4)

    # Case 1: tiny (num_rois=8, num_classes=32) -> single-block grid.
    N1, C1 = 8, 32
    x1 = jax.random.normal(k1, (N1, C1), dtype=jnp.float32)
    t1 = jax.random.randint(k2, (N1,), 0, C1, dtype=jnp.int32)
    out1 = jax.block_until_ready(focal_loss(x1, t1))
    ref1 = _focal_loss_ref(x1, t1)
    assert jnp.allclose(out1, ref1, rtol=1e-5, atol=1e-5), (out1, ref1)

    # Case 2: multi-block grid; N not a tile multiple -> partial last block
    # exercises the in-kernel OOB row mask (no wrapper padding).
    N2, C2 = 40, 32
    x2 = jax.random.normal(k3, (N2, C2), dtype=jnp.float32)
    t2 = jax.random.randint(k4, (N2,), 0, C2, dtype=jnp.int32)
    out2 = jax.block_until_ready(focal_loss(x2, t2, block_rows=16))
    ref2 = _focal_loss_ref(x2, t2)
    assert jnp.allclose(out2, ref2, rtol=1e-5, atol=1e-5), (out2, ref2)

    print("KERNEL_OK")
</pallas_src>

<mosaic_0001>
module attributes {stable_mosaic.version = 11 : i64} {
  func.func @_focal_loss_kernel(%arg0: i32, %arg1: memref<8x32xf32, #tpu.memory_space<vmem>>, %arg2: memref<8x1xi32, #tpu.memory_space<vmem>>, %arg3: memref<8x128xf32, #tpu.memory_space<vmem>>) attributes {dimension_semantics = [#tpu.dimension_semantics<parallel>], iteration_bounds = array<i64: 1>, scalar_prefetch = 0 : i64, scratch_operands = 0 : i64, tpu.core_type = #tpu.core_type<tc>, window_params = [{transform_indices = @transform_0, window_bounds = array<i64: 8, 32>}, {transform_indices = @transform_1, window_bounds = array<i64: 8, 1>}, {transform_indices = @transform_2, window_bounds = array<i64: 8, 128>}]} {
    %c0 = arith.constant 0 : index
    %c0_0 = arith.constant 0 : index
    %0 = vector.load %arg1[%c0, %c0_0] : memref<8x32xf32, #tpu.memory_space<vmem>>, vector<8x32xf32>
    %c0_1 = arith.constant 0 : index
    %c0_2 = arith.constant 0 : index
    %1 = vector.load %arg2[%c0_1, %c0_2] : memref<8x1xi32, #tpu.memory_space<vmem>>, vector<8x1xi32>
    %c8_i32 = arith.constant 8 : i32
    %2 = arith.muli %arg0, %c8_i32 : i32
    %3 = tpu.iota {dimensions = array<i32: 0>} : vector<8x1xi32>
    %4 = vector.broadcast %2 : i32 to vector<8x1xi32>
    %5 = arith.addi %4, %3 : vector<8x1xi32>
    %c8_i32_3 = arith.constant 8 : i32
    %6 = vector.broadcast %c8_i32_3 : i32 to vector<8x1xi32>
    %7 = arith.cmpi slt, %5, %6 : vector<8x1xi32>
    %cst = arith.constant dense<0xFF800000> : vector<8xf32>
    %8 = vector.multi_reduction <maximumf>, %0, %cst [1] : vector<8x32xf32> to vector<8xf32>
    %9 = vector.shape_cast %8 : vector<8xf32> to vector<8x1xf32>
    %10 = vector.broadcast %9 : vector<8x1xf32> to vector<8x32xf32>
    %11 = arith.subf %0, %10 : vector<8x32xf32>
    %12 = math.exp %11 : vector<8x32xf32>
    %cst_4 = arith.constant dense<0.000000e+00> : vector<8xf32>
    %13 = vector.multi_reduction <add>, %12, %cst_4 [1] : vector<8x32xf32> to vector<8xf32>
    %14 = vector.shape_cast %13 : vector<8xf32> to vector<8x1xf32>
    %15 = math.log %14 : vector<8x1xf32>
    %16 = tpu.iota {dimensions = array<i32: 1>} : vector<8x32xi32>
    %17 = vector.broadcast %1 : vector<8x1xi32> to vector<8x32xi32>
    %18 = arith.cmpi eq, %16, %17 : vector<8x32xi32>
    %cst_5 = arith.constant 0.000000e+00 : f32
    %19 = vector.broadcast %cst_5 : f32 to vector<8x32xf32>
    %20 = arith.select %18, %11, %19 : vector<8x32xi1>, vector<8x32xf32>
    %cst_6 = arith.constant dense<0.000000e+00> : vector<8xf32>
    %21 = vector.multi_reduction <add>, %20, %cst_6 [1] : vector<8x32xf32> to vector<8xf32>
    %22 = vector.shape_cast %21 : vector<8xf32> to vector<8x1xf32>
    %23 = arith.subf %22, %15 : vector<8x1xf32>
    %24 = math.exp %23 : vector<8x1xf32>
    %c0_i32 = arith.constant 0 : i32
    %25 = vector.broadcast %c0_i32 : i32 to vector<8x1xi32>
    %26 = arith.cmpi sgt, %1, %25 : vector<8x1xi32>
    %cst_7 = arith.constant 2.500000e-01 : f32
    %cst_8 = arith.constant 7.500000e-01 : f32
    %27 = vector.broadcast %cst_7 : f32 to vector<8x1xf32>
    %28 = vector.broadcast %cst_8 : f32 to vector<8x1xf32>
    %29 = arith.select %26, %27, %28 : vector<8x1xi1>, vector<8x1xf32>
    %cst_9 = arith.constant 1.000000e+00 : f32
    %30 = vector.broadcast %cst_9 : f32 to vector<8x1xf32>
    %31 = arith.subf %30, %24 : vector<8x1xf32>
    %32 = arith.mulf %31, %31 : vector<8x1xf32>
    %cst_10 = arith.constant 0.000000e+00 : f32
    %33 = vector.broadcast %cst_10 : f32 to vector<8x1xf32>
    %34 = arith.subf %33, %32 : vector<8x1xf32>
    %35 = arith.mulf %23, %29 : vector<8x1xf32>
    %36 = arith.mulf %34, %35 : vector<8x1xf32>
    %cst_11 = arith.constant 0.000000e+00 : f32
    %37 = vector.broadcast %cst_11 : f32 to vector<8x1xf32>
    %38 = arith.select %7, %36, %37 : vector<8x1xi1>, vector<8x1xf32>
    %39 = vector.shape_cast %38 : vector<8x1xf32> to vector<1x8x1xf32>
    %cst_12 = arith.constant dense<0.000000e+00> : vector<1xf32>
    %40 = vector.multi_reduction <add>, %39, %cst_12 [1, 2] : vector<1x8x1xf32> to vector<1xf32>
    %41 = vector.shape_cast %40 : vector<1xf32> to vector<1x1x1xf32>
    %42 = vector.extract %41[0, 0, 0] : f32 from vector<1x1x1xf32>
    %43 = tpu.iota {dimensions = array<i32: 0>} : vector<8x128xi32>
    %44 = tpu.iota {dimensions = array<i32: 1>} : vector<8x128xi32>
    %c0_i32_13 = arith.constant 0 : i32
    %45 = vector.broadcast %c0_i32_13 : i32 to vector<8x128xi32>
    %46 = arith.cmpi eq, %43, %45 : vector<8x128xi32>
    %c0_i32_14 = arith.constant 0 : i32
    %47 = vector.broadcast %c0_i32_14 : i32 to vector<8x128xi32>
    %48 = arith.cmpi eq, %44, %47 : vector<8x128xi32>
    %49 = arith.andi %46, %48 : vector<8x128xi1>
    %cst_15 = arith.constant 0.000000e+00 : f32
    %50 = vector.broadcast %42 : f32 to vector<8x128xf32>
    %51 = vector.broadcast %cst_15 : f32 to vector<8x128xf32>
    %52 = arith.select %49, %50, %51 : vector<8x128xi1>, vector<8x128xf32>
    %c0_16 = arith.constant 0 : index
    %c0_17 = arith.constant 0 : index
    %53 = vector.load %arg3[%c0_16, %c0_17] : memref<8x128xf32, #tpu.memory_space<vmem>>, vector<8x128xf32>
    tpu.vector_store %arg3[%c0_16, %c0_17], %52 {strides = array<i32>} : memref<8x128xf32, #tpu.memory_space<vmem>>, vector<8x128xf32>,
    return
  }
  func.func @transform_0(%arg0: i32) -> (i32, i32) {
    %c0_i32 = arith.constant 0 : i32
    %c0_i32_0 = arith.constant 0 : i32
    return %arg0, %c0_i32 : i32, i32
  }
  func.func @transform_1(%arg0: i32) -> (i32, i32) {
    %c0_i32 = arith.constant 0 : i32
    %c0_i32_0 = arith.constant 0 : i32
    return %arg0, %c0_i32 : i32, i32
  }
  func.func @transform_2(%arg0: i32) -> (i32, i32) {
    %c0_i32 = arith.constant 0 : i32
    %c0_i32_0 = arith.constant 0 : i32
    return %arg0, %c0_i32 : i32, i32
  }
}

</mosaic_0001>

<bundles_post_ra>
// kernel: tpu_custom_call.1
= control target key start
LH: loop header
LB: loop body
LE: loop exit
PB: predicated region body
PF: predicated region fallthrough
CT: control target
= control target key end

     0   :  { %vm20_vm0 = vcmask 261120   ;;  %s159_s0 = inlined_call_operand.vmem [shape: f32[8,32], index: 0, kind: input, shape index: {}]   ;;  %s160_s1 = inlined_call_operand.vmem [shape: s32[8,1], index: 1, kind: input, shape index: {}]   ;;  %s161_s2 = inlined_call_operand.hbm [shape: f32[8,128], index: 2, kind: output, shape index: {}]  }
   0x1   :  { %v12_v0 = vld [vmem:[%s159_s0] sm:$0xff] }
   0x2   :  { %7 = vsyncpa [#allocation3], 0  ;;  %v21_v1 = vsel %vm20_vm0, %v12_v0, -inf  ;;  %v120_v2 = vmov 0   ;;  %v13_v3 = vld [vmem:[%s160_s1] sm:$0xff]  ;;  %v15_v7 = vlaneseq  ;;  %v121_v22 = vmov 0.75  }
   0x3   :  { %89 = vset.pattern.permute.xlu0 %v120_v2  ;;  %vm45_vm2 = vcmp.gt.s32.totalorder %v13_v3, 0  ;;  %vm53_vm3 = vcmask 7168   ;;  %s122_s0 = smov [#allocation2]  }
   0x4   :  { %22 = vmax.xlane.f32.xlu0 %v21_v1  ;;  %v33_v8 = vand.u32 127, %v15_v7  ;;  %v46_v23 = vsel %vm45_vm2, 0.25, %v121_v22  ;;  %v16_v36 = vshrl.u32 %v15_v7, 7  ;;  %s76_s1 = sshll.u32 %s122_s0, 4  ;;  %s77_s1 = int_to_ptr.vmem [resolvable:$true] %s76_s1 }
   0x5   :  { %s96_s14 = scalar_lea.vmem %s77_s1, 128  ;;  %p101_p1 = scmp.lt.s32.totalorder %s77_s1, %s77_s1 }
   0x6   :  { %vm64_vm4 = vcmp.eq.s32.totalorder %v16_v36, 0  ;;  %vm65_vm5 = vcmp.eq.s32.totalorder %v33_v8, 0  ;;  %p97_p0 = scmp.ne.s32.totalorder %s77_s1, %s96_s14  ;;  %p102_p2 = scmp.lt.s32.totalorder %s96_s14, %s96_s14 }
   0x7   :  { %vm66_vm6 = vmand %vm64_vm4, %vm65_vm5 }
   0x8   :  { %p103_p3 = por %p102_p2, %p101_p1 }
   0xa   :  { %p104_p4 = pnand %p103_p3, %p97_p0 }
  0x1a   :  { %35 = vperm.xlu0 %89, %v13_v3  }
  0x91   :  { %v23_v4 = vpop.xlane.xlu0 %22 }
  0x92   :  { %v24_v5 = vsub.f32 %v12_v0, %v23_v4 }
  0x94   :  { %v25_v6 = vmul.f32 1.442695, %v24_v5 }
  0x96   :  { %90 = vpow2.f32 %v25_v6 }
  0x99   :  { %v36_v9 = vpop.permute.xlu0 %35 }
  0x9a   :  { %vm37_vm1 = vcmp.eq.s32.totalorder %v33_v8, %v36_v9 }
  0x9b   :  { %v38_v12 = vsel %vm37_vm1, %v24_v5, 0.0 }
  0x9c   :  { %v39_v13 = vsel %vm20_vm0, %v38_v12, 0.0 }
  0xa0   :  { %v91_v10 = vpop.eup %90 }
  0xa1   :  { %v27_v11 = vsel %vm20_vm0, %v91_v10, 0.0 }
  0xa2   :  { %28 = vadd.xlane.f32.xlu1 %v27_v11 }
  0xa6   :  { %40 = vadd.xlane.f32.xlu1 %v39_v13 }
 0x12f   :  { %v29_v14 = vpop.xlane.xlu1 %28 }
 0x130   :  { %92 = vlog2.f32 %v29_v14 }
 0x133   :  { %v41_v17 = vpop.xlane.xlu1 %40 }
 0x13a   :  { %v93_v15 = vpop.eup %92 }
 0x13b   :  { %v31_v16 = vmul.f32 0.6931472, %v93_v15 }
 0x13d   :  { %v42_v18 = vsub.f32 %v41_v17, %v31_v16 }
 0x13f   :  { %v43_v19 = vmul.f32 1.442695, %v42_v18  ;;  %v50_v25 = vmul.f32 %v46_v23, %v42_v18 }
 0x141   :  { %94 = vpow2.f32 %v43_v19 }
 0x14b   :  { %v95_v20 = vpop.eup %94 }
 0x14c   :  { %v47_v21 = vsub.f32 1.0, %v95_v20 }
 0x14e   :  { %v48_v24 = vmul.f32 %v47_v21, %v47_v21 }
 0x150   :  { %v49_v26 = vsub.f32 0.0, %v48_v24 }
 0x152   :  { %v51_v27 = vmul.f32 %v50_v25, %v49_v26 }
 0x154   :  { %v54_v28 = vsel %vm53_vm3, %v51_v27, 0.0 }
 0x155   :  { %55 = vadd.xlane.f32.xlu1 %v54_v28 }
 0x1e2   :  { %v56_v29 = vpop.xlane.xlu1 %55 }
 0x1e3   :  { %v57_v30 = vrot.slane %v56_v29, 4 }
 0x1e5   :  { %v58_v31 = vadd.f32 %v57_v30, %v56_v29 }
 0x1e7   :  { %v59_v32 = vrot.slane %v58_v31, 2 }
 0x1e9   :  { %v60_v33 = vadd.f32 %v59_v32, %v58_v31 }
 0x1eb   :  { %v61_v34 = vrot.slane %v60_v33, 1 }
 0x1ed   :  { %v62_v35 = vadd.f32 %v61_v34, %v60_v33 }
 0x1ef   :  { %84 = vpush %v62_v35 }
 0x220   :  { %s85_s13 = spop %84 }
 0x221   :  { %v67_v37 = vstv %s85_s13 }
 0x222   :  { %v68_v38 = vsel %vm66_vm6, %v67_v37, 0.0 }
 0x223   :  { %69 = vst [vmem:[#allocation2] sm:$0xff] %v68_v38 }
 0x224   :  { %107 = shalt.err (!%p104_p4)
}
 0x225   :  { %s108_s17 = scalar_lea.hbm %s161_s2, 128 }
 0x226   :  { %p109_p5 = scmp.ne.s32.totalorder %s161_s2, %s108_s17  ;;  %p112_p6 = scmp.lt.u32.totalorder %s108_s17, %s161_s2 }
 0x228   :  { %p114_p7 = pnand %p112_p6, %p109_p5 }
 0x22a   :  { %117 = shalt.err (!%p114_p7)
}
 0x22b   :  { %79 = dma.vmem_to_hbm [thread:$0]  %s77_s1, 128, %s161_s2, [#allocation3]  }
 0x22c   :  { %118 = dma.done.wait [#allocation3], 128  }
 0x22d   :  { %119 = vsyncadd [#allocation3], 4294967168 }
 0x22e   :  { %83 = vsyncpa [#allocation3], 1 }

</bundles_post_ra>
